<compile_context>
chip_gen: v7x
topology: tpu7x:2x2x1
jax: 0.10.0
libtpu: 0.0.40
codegen_flags: <defaults>
</compile_context>

<pallas_src>
import jax
import jax.numpy as jnp
from jax.experimental import pallas as pl
from jax.experimental.pallas import tpu as pltpu

NEG_SLOPE = 0.01  # torch.nn.LeakyReLU default negative_slope


def _leaky_relu(x):
    return jnp.where(x > 0, x, NEG_SLOPE * x)


def _round_up(x, m):
    return ((x + m - 1) // m) * m


def deep_model_kernel(x_ref, wb_ref, bb_ref, wh_ref, bh_ref, wo_ref, bo_ref, out_ref):
    # Fused branch Linear: block-diagonal weight == [deep_dense | deep_text] Linears, + LeakyReLU.
    h = _leaky_relu(
        jnp.dot(x_ref[...], wb_ref[...], preferred_element_type=jnp.float32)
        + bb_ref[...])
    # head_layer_0 Linear on concat([h_d, h_t]) + LeakyReLU (Dropout(0.0) is identity in eval).
    h1 = _leaky_relu(
        jnp.dot(h.astype(jnp.bfloat16), wh_ref[...], preferred_element_type=jnp.float32)
        + bh_ref[...])
    # head_out Linear.
    logits = (jnp.dot(h1.astype(jnp.bfloat16), wo_ref[...],
                      preferred_element_type=jnp.float32)
              + bo_ref[...])
    # Row softmax (numerically stable); reciprocal goes to the EUP slot instead of a VALU divide.
    m = jnp.max(logits, axis=1, keepdims=True)
    e = jnp.exp(logits - m)
    inv = pl.reciprocal(jnp.sum(e, axis=1, keepdims=True), approx=False)
    out_ref[...] = (e * inv).astype(out_ref.dtype)


def deep_model_batch_forward(params, X_wide, X_deep_dense, X_deep_text, *, max_block_b=512):
    """Fused forward pass.  X_wide is accepted but unused (matches the PyTorch forward)."""
    del X_wide
    B, D_dense = X_deep_dense.shape
    _, D_text = X_deep_text.shape
    H_d = params["w_dense"].shape[1]
    H_t = params["w_text"].shape[1]
    H_h = params["w_head_d"].shape[1]
    C = params["w_out"].shape[1]
    D_in = D_dense + D_text
    H_br = H_d + H_t

    # ---- host-side fusion of the two branches into one block-diagonal Linear ----
    w_branch = jnp.zeros((D_in, H_br), jnp.float32)
    w_branch = w_branch.at[:D_dense, :H_d].set(params["w_dense"])
    w_branch = w_branch.at[D_dense:, H_d:].set(params["w_text"])
    b_branch = jnp.concatenate([params["b_dense"], params["b_text"]], axis=1)
    w_head = jnp.concatenate([params["w_head_d"], params["w_head_t"]], axis=0)

    # bf16 MXU operands (single MXU pass per Linear); f32 biases / accumulation / elementwise.
    w_branch = w_branch.astype(jnp.bfloat16)
    w_head = w_head.astype(jnp.bfloat16)
    w_out = params["w_out"].astype(jnp.bfloat16)

    x = jnp.concatenate([X_deep_dense, X_deep_text], axis=1).astype(jnp.bfloat16)

    # ---- large batch tiles; pad batch so the grid divides evenly ----
    block_b = min(max_block_b, _round_up(B, 8))
    B_pad = _round_up(B, block_b)
    if B_pad != B:
        x = jnp.pad(x, ((0, B_pad - B), (0, 0)))

    grid = (B_pad // block_b,)

    def full(shape):
        # Weights/biases: constant block index -> resident in VMEM, DMA'd only once.
        return pl.BlockSpec(shape, lambda i, _nd=len(shape): (0,) * _nd)

    out = pl.pallas_call(
        deep_model_kernel,
        out_shape=jax.ShapeDtypeStruct((B_pad, C), jnp.float32),
        grid=grid,
        in_specs=[
            pl.BlockSpec((block_b, D_in), lambda i: (i, 0)),   # fused [X_dd | X_dt] tile
            full((D_in, H_br)), full((1, H_br)),               # fused branch Linear (block-diag)
            full((H_br, H_h)), full((1, H_h)),                 # head_layer_0 Linear
            full((H_h, C)), full((1, C)),                      # head_out Linear
        ],
        out_specs=pl.BlockSpec((block_b, C), lambda i: (i, 0)),
        compiler_params=pltpu.CompilerParams(
            dimension_semantics=("parallel",),
            vmem_limit_bytes=32 * 1024 * 1024),
    )(x, w_branch, b_branch, w_head, params["b_head"], w_out, params["b_out"])

    return out[:B]


def reference_forward(params, X_wide, X_deep_dense, X_deep_text):
    """Pure-JAX f32 reference mirroring the PyTorch module (eval mode)."""
    del X_wide
    h_d = _leaky_relu(X_deep_dense @ params["w_dense"] + params["b_dense"])
    h_t = _leaky_relu(X_deep_text @ params["w_text"] + params["b_text"])
    deep_side = jnp.concatenate([h_d, h_t], axis=1)
    w_head = jnp.concatenate([params["w_head_d"], params["w_head_t"]], axis=0)
    h1 = _leaky_relu(deep_side @ w_head + params["b_head"])
    logits = h1 @ params["w_out"] + params["b_out"]
    return jax.nn.softmax(logits, axis=1)


def init_params(key, D_dense, D_text, H_d, H_t, H_h, C):
    """Deterministic torch.nn.Linear-style init: U(-1/sqrt(fan_in), 1/sqrt(fan_in))."""
    def linear(k, fan_in, fan_out):
        kw, kb = jax.random.split(k)
        bound = 1.0 / jnp.sqrt(fan_in)
        w = jax.random.uniform(kw, (fan_in, fan_out), jnp.float32, -bound, bound)
        b = jax.random.uniform(kb, (1, fan_out), jnp.float32, -bound, bound)
        return w, b

    k1, k2, k3, k4 = jax.random.split(key, 4)
    w_dense, b_dense = linear(k1, D_dense, H_d)
    w_text, b_text = linear(k2, D_text, H_t)
    w_head, b_head = linear(k3, H_d + H_t, H_h)
    w_out, b_out = linear(k4, H_h, C)
    return {
        "w_dense": w_dense, "b_dense": b_dense,
        "w_text": w_text, "b_text": b_text,
        "w_head_d": w_head[:H_d], "w_head_t": w_head[H_d:], "b_head": b_head,
        "w_out": w_out, "b_out": b_out,
    }


if __name__ == "__main__":
    B, D_wide, D_dense, D_text = 16, 8, 32, 16
    H_d, H_t, H_h, C = 32, 16, 24, 2

    key = jax.random.PRNGKey(0)
    kp, kw, kd, kt = jax.random.split(key, 4)
    params = init_params(kp, D_dense, D_text, H_d, H_t, H_h, C)

    X_wide = jax.random.normal(kw, (B, D_wide), jnp.float32)        # unused in forward
    X_deep_dense = jax.random.normal(kd, (B, D_dense), jnp.float32)
    X_deep_text = jax.random.normal(kt, (B, D_text), jnp.float32)

    out = deep_model_batch_forward(params, X_wide, X_deep_dense, X_deep_text)
    out = jax.block_until_ready(out)

    ref = reference_forward(params, X_wide, X_deep_dense, X_deep_text)
    assert out.shape == (B, C)
    # bf16 MXU inputs vs f32 reference -> relaxed tolerance (per perf review).
    assert jnp.allclose(out, ref, atol=2e-2, rtol=2e-2), "mismatch vs pure-JAX reference"
    assert jnp.allclose(jnp.sum(out, axis=1), 1.0, atol=1e-5), "softmax rows must sum to 1"

    print("KERNEL_OK")
</pallas_src>

<mosaic_0001>
module attributes {stable_mosaic.version = 11 : i64} {
  func.func @deep_model_kernel(%arg0: i32, %arg1: memref<16x48xbf16, #tpu.memory_space<vmem>>, %arg2: memref<48x48xbf16, #tpu.memory_space<vmem>>, %arg3: memref<1x48xf32, #tpu.memory_space<vmem>>, %arg4: memref<48x24xbf16, #tpu.memory_space<vmem>>, %arg5: memref<1x24xf32, #tpu.memory_space<vmem>>, %arg6: memref<24x2xbf16, #tpu.memory_space<vmem>>, %arg7: memref<1x2xf32, #tpu.memory_space<vmem>>, %arg8: memref<16x2xf32, #tpu.memory_space<vmem>>) attributes {dimension_semantics = [#tpu.dimension_semantics<parallel>], iteration_bounds = array<i64: 1>, scalar_prefetch = 0 : i64, scratch_operands = 0 : i64, tpu.core_type = #tpu.core_type<tc>, window_params = [{transform_indices = @transform_0, window_bounds = array<i64: 16, 48>}, {pipeline_mode = #tpu.pipeline_mode<synchronous>, transform_indices = @transform_1, window_bounds = array<i64: 48, 48>}, {pipeline_mode = #tpu.pipeline_mode<synchronous>, transform_indices = @transform_2, window_bounds = array<i64: 1, 48>}, {pipeline_mode = #tpu.pipeline_mode<synchronous>, transform_indices = @transform_3, window_bounds = array<i64: 48, 24>}, {pipeline_mode = #tpu.pipeline_mode<synchronous>, transform_indices = @transform_4, window_bounds = array<i64: 1, 24>}, {pipeline_mode = #tpu.pipeline_mode<synchronous>, transform_indices = @transform_5, window_bounds = array<i64: 24, 2>}, {pipeline_mode = #tpu.pipeline_mode<synchronous>, transform_indices = @transform_6, window_bounds = array<i64: 1, 2>}, {transform_indices = @transform_7, window_bounds = array<i64: 16, 2>}]} {
    %c0 = arith.constant 0 : index
    %c0_0 = arith.constant 0 : index
    %0 = vector.load %arg1[%c0, %c0_0] : memref<16x48xbf16, #tpu.memory_space<vmem>>, vector<16x48xbf16>
    %c0_1 = arith.constant 0 : index
    %c0_2 = arith.constant 0 : index
    %1 = vector.load %arg2[%c0_1, %c0_2] : memref<48x48xbf16, #tpu.memory_space<vmem>>, vector<48x48xbf16>
    %cst = arith.constant dense<0.000000e+00> : vector<16x48xf32>
    %2 = tpu.matmul %0, %1, %cst {dimension_numbers = #tpu.dot_dimension_numbers<[1], [0], [0], [1], [0, 0, 1, 1], [], []>} : vector<16x48xbf16>, vector<48x48xbf16>, vector<16x48xf32> -> vector<16x48xf32>
    %c0_3 = arith.constant 0 : index
    %c0_4 = arith.constant 0 : index
    %3 = vector.load %arg3[%c0_3, %c0_4] : memref<1x48xf32, #tpu.memory_space<vmem>>, vector<1x48xf32>
    %4 = vector.broadcast %3 : vector<1x48xf32> to vector<16x48xf32>
    %5 = arith.addf %2, %4 : vector<16x48xf32>
    %cst_5 = arith.constant 0.000000e+00 : f32
    %6 = vector.broadcast %cst_5 : f32 to vector<16x48xf32>
    %7 = arith.cmpf ogt, %5, %6 : vector<16x48xf32>
    %cst_6 = arith.constant 0.00999999977 : f32
    %8 = vector.broadcast %cst_6 : f32 to vector<16x48xf32>
    %9 = arith.mulf %8, %5 : vector<16x48xf32>
    %10 = arith.select %7, %5, %9 : vector<16x48xi1>, vector<16x48xf32>
    %11 = arith.truncf %10 : vector<16x48xf32> to vector<16x48xbf16>
    %c0_7 = arith.constant 0 : index
    %c0_8 = arith.constant 0 : index
    %12 = vector.load %arg4[%c0_7, %c0_8] : memref<48x24xbf16, #tpu.memory_space<vmem>>, vector<48x24xbf16>
    %cst_9 = arith.constant dense<0.000000e+00> : vector<16x24xf32>
    %13 = tpu.matmul %11, %12, %cst_9 {dimension_numbers = #tpu.dot_dimension_numbers<[1], [0], [0], [1], [0, 0, 1, 1], [], []>} : vector<16x48xbf16>, vector<48x24xbf16>, vector<16x24xf32> -> vector<16x24xf32>
    %c0_10 = arith.constant 0 : index
    %c0_11 = arith.constant 0 : index
    %14 = vector.load %arg5[%c0_10, %c0_11] : memref<1x24xf32, #tpu.memory_space<vmem>>, vector<1x24xf32>
    %15 = vector.broadcast %14 : vector<1x24xf32> to vector<16x24xf32>
    %16 = arith.addf %13, %15 : vector<16x24xf32>
    %cst_12 = arith.constant 0.000000e+00 : f32
    %17 = vector.broadcast %cst_12 : f32 to vector<16x24xf32>
    %18 = arith.cmpf ogt, %16, %17 : vector<16x24xf32>
    %cst_13 = arith.constant 0.00999999977 : f32
    %19 = vector.broadcast %cst_13 : f32 to vector<16x24xf32>
    %20 = arith.mulf %19, %16 : vector<16x24xf32>
    %21 = arith.select %18, %16, %20 : vector<16x24xi1>, vector<16x24xf32>
    %22 = arith.truncf %21 : vector<16x24xf32> to vector<16x24xbf16>
    %c0_14 = arith.constant 0 : index
    %c0_15 = arith.constant 0 : index
    %23 = vector.load %arg6[%c0_14, %c0_15] : memref<24x2xbf16, #tpu.memory_space<vmem>>, vector<24x2xbf16>
    %cst_16 = arith.constant dense<0.000000e+00> : vector<16x2xf32>
    %24 = tpu.matmul %22, %23, %cst_16 {dimension_numbers = #tpu.dot_dimension_numbers<[1], [0], [0], [1], [0, 0, 1, 1], [], []>} : vector<16x24xbf16>, vector<24x2xbf16>, vector<16x2xf32> -> vector<16x2xf32>
    %c0_17 = arith.constant 0 : index
    %c0_18 = arith.constant 0 : index
    %25 = vector.load %arg7[%c0_17, %c0_18] : memref<1x2xf32, #tpu.memory_space<vmem>>, vector<1x2xf32>
    %26 = vector.broadcast %25 : vector<1x2xf32> to vector<16x2xf32>
    %27 = arith.addf %24, %26 : vector<16x2xf32>
    %cst_19 = arith.constant dense<0xFF800000> : vector<16xf32>
    %28 = vector.multi_reduction <maximumf>, %27, %cst_19 [1] : vector<16x2xf32> to vector<16xf32>
    %29 = vector.shape_cast %28 : vector<16xf32> to vector<16x1xf32>
    %30 = vector.broadcast %29 : vector<16x1xf32> to vector<16x2xf32>
    %31 = arith.subf %27, %30 : vector<16x2xf32>
    %32 = math.exp %31 : vector<16x2xf32>
    %cst_20 = arith.constant dense<0.000000e+00> : vector<16xf32>
    %33 = vector.multi_reduction <add>, %32, %cst_20 [1] : vector<16x2xf32> to vector<16xf32>
    %34 = vector.shape_cast %33 : vector<16xf32> to vector<16x1xf32>
    %35 = tpu.reciprocal %34 : vector<16x1xf32> -> vector<16x1xf32>
    %36 = vector.broadcast %35 : vector<16x1xf32> to vector<16x2xf32>
    %37 = arith.mulf %32, %36 : vector<16x2xf32>
    %c0_21 = arith.constant 0 : index
    %c0_22 = arith.constant 0 : index
    %38 = vector.load %arg8[%c0_21, %c0_22] : memref<16x2xf32, #tpu.memory_space<vmem>>, vector<16x2xf32>
    tpu.vector_store %arg8[%c0_21, %c0_22], %37 {strides = array<i32>} : memref<16x2xf32, #tpu.memory_space<vmem>>, vector<16x2xf32>,
    return
  }
  func.func @transform_0(%arg0: i32) -> (i32, i32) {
    %c0_i32 = arith.constant 0 : i32
    %c0_i32_0 = arith.constant 0 : i32
    return %arg0, %c0_i32 : i32, i32
  }
  func.func @transform_1(%arg0: i32) -> (i32, i32) {
    %c0_i32 = arith.constant 0 : i32
    %c0_i32_0 = arith.constant 0 : i32
    %c0_i32_1 = arith.constant 0 : i32
    return %c0_i32, %c0_i32_0 : i32, i32
  }
  func.func @transform_2(%arg0: i32) -> (i32, i32) {
    %c0_i32 = arith.constant 0 : i32
    %c0_i32_0 = arith.constant 0 : i32
    %c0_i32_1 = arith.constant 0 : i32
    return %c0_i32, %c0_i32_0 : i32, i32
  }
  func.func @transform_3(%arg0: i32) -> (i32, i32) {
    %c0_i32 = arith.constant 0 : i32
    %c0_i32_0 = arith.constant 0 : i32
    %c0_i32_1 = arith.constant 0 : i32
    return %c0_i32, %c0_i32_0 : i32, i32
  }
  func.func @transform_4(%arg0: i32) -> (i32, i32) {
    %c0_i32 = arith.constant 0 : i32
    %c0_i32_0 = arith.constant 0 : i32
    %c0_i32_1 = arith.constant 0 : i32
    return %c0_i32, %c0_i32_0 : i32, i32
  }
  func.func @transform_5(%arg0: i32) -> (i32, i32) {
    %c0_i32 = arith.constant 0 : i32
    %c0_i32_0 = arith.constant 0 : i32
    %c0_i32_1 = arith.constant 0 : i32
    return %c0_i32, %c0_i32_0 : i32, i32
  }
  func.func @transform_6(%arg0: i32) -> (i32, i32) {
    %c0_i32 = arith.constant 0 : i32
    %c0_i32_0 = arith.constant 0 : i32
    %c0_i32_1 = arith.constant 0 : i32
    return %c0_i32, %c0_i32_0 : i32, i32
  }
  func.func @transform_7(%arg0: i32) -> (i32, i32) {
    %c0_i32 = arith.constant 0 : i32
    %c0_i32_0 = arith.constant 0 : i32
    return %arg0, %c0_i32 : i32, i32
  }
}

</mosaic_0001>

<bundles_post_ra>
// kernel: tpu_custom_call.1
= control target key start
LH: loop header
LB: loop body
LE: loop exit
PB: predicated region body
PF: predicated region fallthrough
CT: control target
= control target key end

     0   :  { %v369_v0 = vmov 0.0   ;;  %vm370_vm0 = vmmov 0   ;;  %vm65_vm1 = vcmask 392192   ;;  %vm222_vm4 = vcmask 1043456   ;;  %s464_s1 = inlined_call_operand.vmem [shape: bf16[48,48], index: 1, kind: input, shape index: {}]   ;;  %s465_s3 = inlined_call_operand.vmem [shape: bf16[48,24], index: 3, kind: input, shape index: {}]   ;;  %s466_s0 = inlined_call_operand.vmem [shape: bf16[16,48], index: 0, kind: input, shape index: {}]   ;;  %s467_s2 = inlined_call_operand.vmem [shape: f32[1,48], index: 2, kind: input, shape index: {}]   ;;  %s468_s5 = inlined_call_operand.vmem [shape: bf16[24,2], index: 5, kind: input, shape index: {}]   ;;  %s469_s4 = inlined_call_operand.vmem [shape: f32[1,24], index: 4, kind: input, shape index: {}]   ;;  %s470_s6 = inlined_call_operand.vmem [shape: f32[1,2], index: 6, kind: input, shape index: {}]   ;;  %s471_s7 = inlined_call_operand.vmem [shape: f32[16,2], index: 7, kind: output, shape index: {}]  }
   0x1   :  { %322 = vmatprep.subr.bf16.mxu0 %v369_v0  ;;  %v352_v1 = vld [vmem:[%s464_s1] sm:$0xff]   ;;  %328 = vmatprep.mubr.msk.bf16.mxu0 %vm370_vm0, %v369_v0  ;;  %v353_v2 = vld [vmem:[%s464_s1 + $0x8] sm:$0xff]   ;;  %v354_v4 = vld [vmem:[%s464_s1 + $0x10] sm:$0xff]   ;;  %vm218_vm7 = vcmask 195584   ;;  %vm267_vm8 = vcmask 15360  }
   0x2   :  { %332 = vmatprep.subr.bf16.mxu1 %v369_v0  ;;  %338 = vmatprep.mubr.msk.bf16.mxu1 %vm370_vm0, %v369_v0  ;;  %v356_v3 = vld [vmem:[%s465_s3] sm:$0xff]   ;;  %v357_v6 = vld [vmem:[%s465_s3 + $0x8] sm:$0xff]   ;;  %v358_v7 = vld [vmem:[%s465_s3 + $0x10] sm:$0xff]  }
   0x3   :  { %323 = vmatpush3.bf16.msra.mxu0 %v352_v1  ;;  %333 = vmatpush3.bf16.msra.mxu1 %v356_v3  ;;  %v355_v5 = vld [vmem:[%s466_s0] sm:$0xff]   ;;  %v360_v21 = vld [vmem:[%s468_s5 + $0x8] ss:$0 sps:$4 sm:$0xff]  }
   0x4   :  { %324 = vmatprep.subr.bf16.mxu0 %v369_v0  ;;  %334 = vmatprep.subr.bf16.mxu1 %v369_v0  ;;  %v296_v8 = vld [vmem:[%s467_s2] ss:$0 sm:$0xff]  ;;  %v224_v22 = vsel %vm222_vm4, %v360_v21, 0 }
   0x5   :  { %v359_v20 = vld [vmem:[%s468_s5] sm:$0xff]  }
   0x6   :  { %v302_v23 = vld [vmem:[%s469_s4] ss:$0 sm:$0xff] }
   0x7   :  { %325 = vmatpush3.bf16.msra.mxu0 %v353_v2  ;;  %335 = vmatpush3.bf16.msra.mxu1 %v357_v6  ;;  %v307_v35 = vld [vmem:[%s470_s6] ss:$0 sm:$0xff] }
   0x8   :  { %326 = vmatprep.subr.bf16.mxu0 %v369_v0  ;;  %336 = vmatprep.subr.bf16.mxu1 %v369_v0 }
   0xb   :  { %327 = vmatpush3.bf16.msra.mxu0 %v354_v4  ;;  %337 = vmatpush3.bf16.msra.mxu1 %v358_v7 }
   0xc   :  { %342 = vmatprep.subr.bf16.mxu0 %v369_v0 }
   0xe   :  { %329 = vmatmul.mubr.msk.bf16.vlgmr.msra.gmra.mrb[0].mxu0 %vm65_vm1, %v355_v5 }
   0xf   :  { %346 = vmatprep.mubr.msk.bf16.mxu0 %vm370_vm0, %v369_v0  ;;  %343 = vmatpush3.bf16.msra.mxu0 %v359_v20 }
  0x10   :  { %344 = vmatprep.subr.bf16.mxu0 %v369_v0 }
  0x13   :  { %345 = vmatpush3.bf16.msra.mxu0 %v224_v22 }
  0xe1   :  { %v103_v9 = vpop.f32.mrb[0].mxu0 }
  0xe2   :  { %v104_v10 = vadd.f32 %v296_v8, %v103_v9  ;;  %v330_v11 = vpop.f32.mrb[1].mxu0 }
  0xe3   :  { %v106_v12 = vpop.f32.mrb[2].mxu0 }
  0xe4   :  { %v112_v13 = vmul.f32 0.01, %v104_v10  ;;  %v107_v14 = vadd.f32 %v296_v8, %v106_v12  ;;  %v331_v15 = vpop.f32.mrb[3].mxu0  ;;  %vm110_vm2 = vcmp.gt.f32.partialorder %v104_v10, 0.0 }
  0xe6   :  { %vm111_vm3 = vcmp.gt.f32.partialorder %v107_v14, 0.0  ;;  %v113_v16 = vmul.f32 0.01, %v107_v14  ;;  %v114_v17 = vsel %vm110_vm2, %v104_v10, %v112_v13 }
  0xe8   :  { %v115_v18 = vsel %vm111_vm3, %v107_v14, %v113_v16 }
  0xe9   :  { %v116_v19 = vpack.c.bf16 %v115_v18, %v114_v17 }
  0xeb   :  { %339 = vmatmul.mubr.msk.bf16.vlgmr.msra.gmra.mrb[0].mxu1 %vm65_vm1, %v116_v19 }
 0x1be   :  { %v185_v24 = vpop.f32.mrb[0].mxu1 }
 0x1bf   :  { %v186_v25 = vadd.f32 %v302_v23, %v185_v24  ;;  %v340_v26 = vpop.f32.mrb[1].mxu1 }
 0x1c0   :  { %v188_v27 = vpop.f32.mrb[2].mxu1 }
 0x1c1   :  { %v194_v28 = vmul.f32 0.01, %v186_v25  ;;  %v189_v29 = vadd.f32 %v302_v23, %v188_v27  ;;  %v341_v30 = vpop.f32.mrb[3].mxu1  ;;  %vm192_vm5 = vcmp.gt.f32.partialorder %v186_v25, 0.0 }
 0x1c3   :  { %vm193_vm6 = vcmp.gt.f32.partialorder %v189_v29, 0.0  ;;  %v195_v31 = vmul.f32 0.01, %v189_v29  ;;  %v196_v32 = vsel %vm192_vm5, %v186_v25, %v194_v28 }
 0x1c5   :  { %v197_v33 = vsel %vm193_vm6, %v189_v29, %v195_v31 }
 0x1c6   :  { %v198_v34 = vpack.c.bf16 %v197_v33, %v196_v32 }
 0x1c8   :  { %347 = vmatmul.mubr.msk.bf16.vlgmr.msra.gmra.mrb[4].mxu0 %vm218_vm7, %v198_v34 }
 0x29b   :  { %v260_v36 = vpop.f32.mrb[4].mxu0 }
 0x29c   :  { %v261_v37 = vadd.f32 %v307_v35, %v260_v36  ;;  %v348_v38 = vpop.f32.mrb[5].mxu0 }
 0x29d   :  { %v263_v39 = vpop.f32.mrb[6].mxu0 }
 0x29e   :  { %v264_v40 = vadd.f32 %v307_v35, %v263_v39  ;;  %v349_v41 = vpop.f32.mrb[7].mxu0  ;;  %v268_v42 = vsel %vm267_vm8, %v261_v37, -inf }
 0x29f   :  { %269 = vmax.xlane.f32.xlu0 %v268_v42 }
 0x2a0   :  { %v271_v43 = vsel %vm267_vm8, %v264_v40, -inf }
 0x2a3   :  { %272 = vmax.xlane.f32.xlu0 %v271_v43 }
 0x32c   :  { %v270_v44 = vpop.xlane.xlu0 %269 }
 0x32d   :  { %v274_v45 = vsub.f32 %v261_v37, %v270_v44 }
 0x32f   :  { %v276_v46 = vmul.f32 1.442695, %v274_v45 }
 0x330   :  { %v273_v47 = vpop.xlane.xlu0 %272 }
 0x331   :  { %361 = vpow2.f32 %v276_v46  ;;  %v275_v48 = vsub.f32 %v264_v40, %v273_v47 }
 0x333   :  { %v278_v49 = vmul.f32 1.442695, %v275_v48 }
 0x335   :  { %363 = vpow2.f32 %v278_v49 }
 0x33b   :  { %v362_v50 = vpop.eup %361 }
 0x33c   :  { %v280_v51 = vsel %vm267_vm8, %v362_v50, 0.0 }
 0x33d   :  { %281 = vadd.xlane.f32.xlu1 %v280_v51 }
 0x33f   :  { %v364_v52 = vpop.eup %363 }
 0x340   :  { %v283_v53 = vsel %vm267_vm8, %v364_v52, 0.0 }
 0x341   :  { %284 = vadd.xlane.f32.xlu1 %v283_v53 }
 0x3ca   :  { %v282_v54 = vpop.xlane.xlu1 %281 }
 0x3cb   :  { %365 = vrcp.f32 %v282_v54 }
 0x3ce   :  { %v285_v55 = vpop.xlane.xlu1 %284 }
 0x3cf   :  { %367 = vrcp.f32 %v285_v55 }
 0x3d5   :  { %v366_v56 = vpop.eup %365 }
 0x3d6   :  { %v288_v57 = vmul.f32 %v366_v56, %v362_v50 }
 0x3d8   :  { %290 = vst.msk [vmem:[%s471_s7] sm:$0xff] %vm267_vm8, %v288_v57 }
 0x3d9   :  { %v368_v58 = vpop.eup %367 }
 0x3da   :  { %v289_v59 = vmul.f32 %v368_v58, %v364_v52 }
 0x3dc   :  { %291 = vst.msk [vmem:[%s471_s7 + $0x8] sm:$0xff] %vm267_vm8, %v289_v59 }

</bundles_post_ra>
